<compile_context>
chip_gen: v6e
topology: v6e:2x2x1
jax: 0.10.0
libtpu: 0.0.40
codegen_flags: <defaults>
</compile_context>

<pallas_src>
import jax
import jax.numpy as jnp
from jax.experimental import pallas as pl
from jax.experimental.pallas import tpu as pltpu


def _h_sigmoid_kernel(x_ref, o_ref):
    x = x_ref[...].astype(jnp.float32)
    # relu6(x + 3) / 6  ==  clamp(x + 3, 0, 6) * (1/6)   (<=1 ulp vs. /6)
    y = jnp.clip(x + 3.0, 0.0, 6.0) * jnp.float32(1.0 / 6.0)
    o_ref[...] = y.astype(o_ref.dtype)


def _h_sigmoid_xla(x):
    # Single fused elementwise pass; used for tiny / lane-unaligned tensors.
    return (jnp.clip(x.astype(jnp.float32) + 3.0, 0.0, 6.0) / 6.0).astype(x.dtype)


def _vmem_budget():
    """(target_tile_bytes, vmem_limit_bytes) derived from the chip's VMEM."""
    try:
        info = pltpu.get_tpu_info()
        vmem_cap = int(getattr(info, "vmem_capacity_bytes", 64 << 20))
    except Exception:
        vmem_cap = 64 << 20  # conservative (v7x-sized) fallback
    vmem_limit = min(vmem_cap * 3 // 4, 64 << 20)   # v7x: 48 MiB, v5e/v6e: 64 MiB
    target_tile_bytes = vmem_limit // 6             # 4x block (pipelined) ~= 2/3 limit
    return target_tile_bytes, vmem_limit


def h_sigmoid(x):
    """Elementwise hard-sigmoid. Any shape / float dtype (NCHW expected)."""
    orig_shape = x.shape
    dtype = x.dtype
    n = x.size
    if n == 0:
        return x

    itemsize = x.dtype.itemsize
    sublane = {4: 8, 2: 16, 1: 32}.get(itemsize)

    # Plain-XLA path: unsupported element width, lane-unaligned total size, or
    # smaller than one (8,128) tile.  This replaces the old pad+slice fallback
    # (no extra HBM passes) and avoids kernel-launch overhead on tiny inputs.
    if sublane is None or (n % 128 != 0) or n < 8 * 128:
        return _h_sigmoid_xla(x)

    # Lane width: widest W (multiple of 128) that divides n exactly, preferring
    # one that still yields at least `sublane` rows.
    candidates = (4096, 2048, 1024, 512, 256, 128)
    W = None
    for cand in candidates:
        if n % cand == 0 and n // cand >= sublane:
            W = cand
            break
    if W is None:
        for cand in candidates:
            if n % cand == 0:
                W = cand
                break
    rows = n // W
    x2 = x.reshape(rows, W)

    # Row tile sized from the per-chip VMEM budget, aligned to the dtype's
    # native sublane packing so stores stay unmasked full-width vst.
    target_tile_bytes, vmem_limit = _vmem_budget()
    desired = max(sublane, (target_tile_bytes // (W * itemsize)) // sublane * sublane)
    tile_rows = min(rows, desired)

    # v7x has 2 TensorCores: keep the parallel grid at >= 2 blocks whenever the
    # array is large enough, instead of collapsing to grid=(1,).
    if tile_rows == rows and rows >= 2 * sublane:
        tile_rows = max(sublane, (rows // 2) // sublane * sublane)
    # TODO(synk): if "parallel" does not shard a 1-D grid across v7x cores,
    # switch this axis to pltpu.CORE_PARALLEL.

    grid = (pl.cdiv(rows, tile_rows),)  # last block may be ragged -> masked stores

    out2 = pl.pallas_call(
        _h_sigmoid_kernel,
        out_shape=jax.ShapeDtypeStruct((rows, W), dtype),
        grid_spec=pltpu.PrefetchScalarGridSpec(
            num_scalar_prefetch=0,
            grid=grid,
            in_specs=[pl.BlockSpec((tile_rows, W), lambda i: (i, 0))],
            out_specs=pl.BlockSpec((tile_rows, W), lambda i: (i, 0)),
        ),
        compiler_params=pltpu.CompilerParams(
            dimension_semantics=("parallel",),
            vmem_limit_bytes=int(vmem_limit),
        ),
        cost_estimate=pl.CostEstimate(
            flops=3 * n,
            transcendentals=0,
            bytes_accessed=2 * n * itemsize,
        ),
    )(x2)

    return out2.reshape(orig_shape)


def h_sigmoid_ref(x):
    return jnp.clip(x + 3.0, 0.0, 6.0) / 6.0


if __name__ == "__main__":
    key = jax.random.PRNGKey(0)
    # NCHW, as PyTorch convention: batch=2, channels=4, spatial=16x16
    x = jax.random.normal(key, (2, 4, 16, 16), dtype=jnp.float32) * 4.0
    out = jax.block_until_ready(h_sigmoid(x))
    ref = h_sigmoid_ref(x)
    assert out.shape == x.shape and out.dtype == x.dtype
    assert jnp.allclose(out, ref, atol=1e-6, rtol=1e-6)

    # Unaligned small tensor -> fused plain-XLA path (no pad / slice copies).
    x2 = jax.random.normal(jax.random.PRNGKey(1), (3, 5, 7), dtype=jnp.bfloat16) * 4.0
    out2 = jax.block_until_ready(h_sigmoid(x2))
    assert out2.shape == x2.shape and out2.dtype == x2.dtype
    assert jnp.allclose(out2.astype(jnp.float32),
                        h_sigmoid_ref(x2.astype(jnp.float32)),
                        atol=1e-2, rtol=1e-2)

    # Aligned bf16 tensor through the kernel path (sublane=16 packing).
    x3 = jax.random.normal(jax.random.PRNGKey(2), (2, 8, 16, 16), dtype=jnp.bfloat16) * 4.0
    out3 = jax.block_until_ready(h_sigmoid(x3))
    assert out3.shape == x3.shape and out3.dtype == x3.dtype
    assert jnp.allclose(out3.astype(jnp.float32),
                        h_sigmoid_ref(x3.astype(jnp.float32)),
                        atol=1e-2, rtol=1e-2)

    print("KERNEL_OK")
</pallas_src>

<mosaic_0001>
module attributes {stable_mosaic.version = 11 : i64} {
  func.func @_h_sigmoid_kernel(%arg0: i32, %arg1: memref<8x256xf32, #tpu.memory_space<vmem>>, %arg2: memref<8x256xf32, #tpu.memory_space<vmem>>) attributes {dimension_semantics = [#tpu.dimension_semantics<parallel>], iteration_bounds = array<i64: 1>, scalar_prefetch = 0 : i64, scratch_operands = 0 : i64, tpu.core_type = #tpu.core_type<tc>, window_params = [{transform_indices = @transform_0, window_bounds = array<i64: 8, 256>}, {transform_indices = @transform_1, window_bounds = array<i64: 8, 256>}]} {
    %c0 = arith.constant 0 : index
    %c0_0 = arith.constant 0 : index
    %0 = vector.load %arg1[%c0, %c0_0] : memref<8x256xf32, #tpu.memory_space<vmem>>, vector<8x256xf32>
    %cst = arith.constant 3.000000e+00 : f32
    %1 = vector.broadcast %cst : f32 to vector<8x256xf32>
    %2 = arith.addf %0, %1 : vector<8x256xf32>
    %cst_1 = arith.constant 0.000000e+00 : f32
    %cst_2 = arith.constant 6.000000e+00 : f32
    %3 = vector.broadcast %cst_1 : f32 to vector<8x256xf32>
    %4 = arith.maximumf %3, %2 : vector<8x256xf32>
    %5 = vector.broadcast %cst_2 : f32 to vector<8x256xf32>
    %6 = arith.minimumf %5, %4 : vector<8x256xf32>
    %cst_3 = arith.constant 0.166666672 : f32
    %7 = vector.broadcast %cst_3 : f32 to vector<8x256xf32>
    %8 = arith.mulf %6, %7 : vector<8x256xf32>
    %c0_4 = arith.constant 0 : index
    %c0_5 = arith.constant 0 : index
    %9 = vector.load %arg2[%c0_4, %c0_5] : memref<8x256xf32, #tpu.memory_space<vmem>>, vector<8x256xf32>
    tpu.vector_store %arg2[%c0_4, %c0_5], %8 {strides = array<i32>} : memref<8x256xf32, #tpu.memory_space<vmem>>, vector<8x256xf32>,
    return
  }
  func.func @transform_0(%arg0: i32) -> (i32, i32) {
    %c0_i32 = arith.constant 0 : i32
    %c0_i32_0 = arith.constant 0 : i32
    return %arg0, %c0_i32 : i32, i32
  }
  func.func @transform_1(%arg0: i32) -> (i32, i32) {
    %c0_i32 = arith.constant 0 : i32
    %c0_i32_0 = arith.constant 0 : i32
    return %arg0, %c0_i32 : i32, i32
  }
}

</mosaic_0001>

<bundles_post_ra>
// kernel: tpu_custom_call.1
= control target key start
LH: loop header
LB: loop body
LE: loop exit
PB: predicated region body
PF: predicated region fallthrough
CT: control target
= control target key end

     0   :  { %6 = vsyncpa [#allocation3], 0  ;;  %s112_s0 = inlined_call_operand.hbm [shape: f32[8,256], index: 0, kind: input, shape index: {}]   ;;  %s113_s1 = inlined_call_operand.hbm [shape: f32[8,256], index: 1, kind: output, shape index: {}]  }
   0x1   :  { %7 = vsyncpa [#allocation4], 0  ;;  %s94_s6 = smov [#allocation2]  }
   0x2   :  { %s14_s7 = sshll.u32 %s94_s6, 4  ;;  %s15_s7 = int_to_ptr.vmem [resolvable:$true] %s14_s7 }
   0x3   :  { %s58_s8 = scalar_lea.vmem %s15_s7, 256  ;;  %p63_p1 = scmp.lt.s32.totalorder %s15_s7, %s15_s7 }
   0x4   :  { %p59_p0 = scmp.ne.s32.totalorder %s15_s7, %s58_s8  ;;  %p64_p2 = scmp.lt.s32.totalorder %s58_s8, %s58_s8 }
   0x6   :  { %p65_p3 = por %p64_p2, %p63_p1 }
   0x8   :  { %p66_p4 = pnand %p65_p3, %p59_p0 }
   0xa   :  { %69 = shalt.err (!%p66_p4)
}
   0xb   :  { %17 = dma.hbm_to_vmem [thread:$0]  %s112_s0, 256, %s15_s7, [#allocation3]  }
   0xc   :  { %90 = dma.done.wait [#allocation3], 256  }
   0xd   :  { %91 = vsyncadd [#allocation3], 4294967040  ;;  %v21_v0 = vld [vmem:[#allocation2] sm:$0xff]  ;;  %v22_v1 = vld [vmem:[#allocation2 + $0x8] sm:$0xff]  ;;  %s95_s11 = smov [#allocation5]  }
   0xe   :  { %v23_v2 = vadd.f32 3.0, %v21_v0  ;;  %v24_v3 = vadd.f32 3.0, %v22_v1  ;;  %s39_s12 = sshll.u32 %s95_s11, 4  ;;  %s40_s12 = int_to_ptr.vmem [resolvable:$true] %s39_s12 }
   0xf   :  { %s70_s13 = scalar_lea.vmem %s40_s12, 256  ;;  %p75_p6 = scmp.lt.s32.totalorder %s40_s12, %s40_s12 }
  0x10   :  { %v25_v4 = vmax.f32 %v23_v2, 0.0  ;;  %v26_v5 = vmax.f32 %v24_v3, 0.0  ;;  %p71_p5 = scmp.ne.s32.totalorder %s40_s12, %s70_s13  ;;  %p76_p7 = scmp.lt.s32.totalorder %s70_s13, %s70_s13 }
  0x12   :  { %v27_v6 = vmin.f32 %v25_v4, 6.0  ;;  %v28_v7 = vmin.f32 %v26_v5, 6.0  ;;  %p77_p8 = por %p76_p7, %p75_p6 }
  0x14   :  { %v29_v8 = vmul.f32 0.16666667, %v27_v6  ;;  %v30_v9 = vmul.f32 0.16666667, %v28_v7  ;;  %p78_p9 = pnand %p77_p8, %p71_p5 }
  0x16   :  { %31 = vst [vmem:[#allocation5] sm:$0xff] %v29_v8  ;;  %32 = vst [vmem:[#allocation5 + $0x8] sm:$0xff] %v30_v9 }
  0x17   :  { %81 = shalt.err (!%p78_p9)
}
  0x18   :  { %42 = dma.vmem_to_hbm [thread:$0]  %s40_s12, 256, %s113_s1, [#allocation4]  }
  0x19   :  { %92 = dma.done.wait [#allocation4], 256  }
  0x1a   :  { %93 = vsyncadd [#allocation4], 4294967040 }
  0x1b   :  { %46 = vsyncpa [#allocation3], 1 }
  0x1c   :  { %47 = vsyncpa [#allocation4], 1 }

</bundles_post_ra>
